<compile_context>
chip_gen: v7x
topology: tpu7x:2x2x1
jax: 0.10.0
libtpu: 0.0.40
codegen_flags: <defaults>
</compile_context>

<pallas_src>
import functools
import math

import jax
import jax.numpy as jnp
from jax.experimental import pallas as pl
from jax.experimental.pallas import tpu as pltpu

KS = 3  # temporal kernel size (1, 3); no padding -> T_out = T - 2


def _round_up(x, m):
    return ((x + m - 1) // m) * m


# ------------------------------ weight packing -------------------------------
def pack_timeblock_weights(ws, bs, T, T_out, cw_pad):
    """Pack three (KS, Cin, Cout) conv weights into a block-Toeplitz matrix.

    W_big[(t+k)*Cin + c, j*cw_pad + t*Cout + o] = ws[j][k, c, o]
    so that  x_flat(M, T*Cin) @ W_big  computes conv_j output for every output
    timestep t in one matmul.  Columns are padded per-conv to a 128 multiple.
    """
    _, Cin, Cout = ws[0].shape
    n = len(ws)
    Wb = jnp.zeros((T * Cin, n * cw_pad), jnp.float32)
    bb = jnp.zeros((1, n * cw_pad), jnp.float32)
    for j, (w, b) in enumerate(zip(ws, bs)):
        col0 = j * cw_pad
        for t in range(T_out):
            for k in range(KS):
                Wb = Wb.at[(t + k) * Cin:(t + k + 1) * Cin,
                           col0 + t * Cout: col0 + (t + 1) * Cout].set(w[k])
            bb = bb.at[:, col0 + t * Cout: col0 + (t + 1) * Cout].set(
                b.reshape(1, Cout))
    return Wb.astype(jnp.bfloat16), bb


# --------------------------------- kernel ------------------------------------
def timeblock_kernel(x_ref, w_ref, b_ref, o_ref, *, cw, cw_pad):
    """x_ref: (tile_m, T*Cin) f32; w_ref: (T*Cin, 3*cw_pad) bf16;
    b_ref: (1, 3*cw_pad) f32; o_ref: (tile_m, cw) f32 with cw = T_out*Cout.

    One MXU dot gives [conv1 | conv2 | conv3] for every output timestep; the
    epilogue is relu(c1 + sigmoid(c2) + c3) done in f32 on aligned lane chunks.
    """
    x_bf16 = x_ref[...].astype(jnp.bfloat16)
    acc = jnp.dot(x_bf16, w_ref[...], preferred_element_type=jnp.float32)
    acc = acc + b_ref[...]
    c1 = acc[:, 0:cw_pad]
    c2 = acc[:, cw_pad:2 * cw_pad]
    c3 = acc[:, 2 * cw_pad:3 * cw_pad]
    out = jnp.maximum(c1 + jax.nn.sigmoid(c2) + c3, 0.0)
    o_ref[...] = out[:, :cw].astype(o_ref.dtype)


# -------------------------------- wrapper ------------------------------------
def timeblock_forward(X, w1, b1, w2, b2, w3, b3):
    """X: (B, N, T, Cin) -> (B, N, T-KS+1, Cout).  Weights: (KS, Cin, Cout)."""
    B, N, T, Cin = X.shape
    Cout = w1.shape[2]
    T_out = T - KS + 1
    cw = T_out * Cout
    cw_pad = _round_up(cw, 128)
    M = B * N

    Wb, bb = pack_timeblock_weights([w1, w2, w3], [b1, b2, b3], T, T_out, cw_pad)

    # Row-major merges are free: (B,N,T,Cin) -> (M, T*Cin).
    x2 = X.reshape(M, T * Cin)

    if M <= 256:
        tile_m, M_pad = M, M
    else:
        tile_m = 256
        M_pad = _round_up(M, tile_m)
    if M_pad != M:
        x2 = jnp.pad(x2, ((0, M_pad - M), (0, 0)))

    out = pl.pallas_call(
        functools.partial(timeblock_kernel, cw=cw, cw_pad=cw_pad),
        out_shape=jax.ShapeDtypeStruct((M_pad, cw), jnp.float32),
        grid=(M_pad // tile_m,),
        in_specs=[
            pl.BlockSpec((tile_m, T * Cin), lambda i: (i, 0)),
            pl.BlockSpec((T * Cin, 3 * cw_pad), lambda i: (0, 0)),
            pl.BlockSpec((1, 3 * cw_pad), lambda i: (0, 0)),
        ],
        out_specs=pl.BlockSpec((tile_m, cw), lambda i: (i, 0)),
        compiler_params=pltpu.CompilerParams(
            dimension_semantics=("parallel",)),
    )(x2, Wb, bb)

    return out[:M].reshape(B, N, T_out, Cout)


# --------------------------- pure-JAX reference -------------------------------
def timeblock_reference(X, w1, b1, w2, b2, w3, b3):
    T = X.shape[2]
    T_out = T - KS + 1

    def conv(w, b):
        acc = jnp.zeros(X.shape[:2] + (T_out, w.shape[2]), jnp.float32)
        for k in range(KS):
            acc = acc + jnp.einsum('bntc,co->bnto',
                                   X[:, :, k:k + T_out, :], w[k])
        return acc + b.reshape(1, 1, 1, -1)

    c1, c2, c3 = conv(w1, b1), conv(w2, b2), conv(w3, b3)
    return jnp.maximum(c1 + jax.nn.sigmoid(c2) + c3, 0.0)


# ----------------------------- parameter init ---------------------------------
def init_params(key, in_channels, out_channels):
    """Weights stored as (KS, Cin, Cout) == PyTorch conv.weight (Cout, Cin, 1, KS)
    transposed; biases as (Cout,).  Init bounds mimic Conv2d defaults."""
    keys = jax.random.split(key, 3)
    bound = 1.0 / math.sqrt(in_channels * KS)

    def conv_params(k):
        kw, kb = jax.random.split(k)
        w = jax.random.uniform(kw, (KS, in_channels, out_channels),
                               jnp.float32, -bound, bound)
        b = jax.random.uniform(kb, (out_channels,), jnp.float32, -bound, bound)
        return w, b

    w1, b1 = conv_params(keys[0])
    w2, b2 = conv_params(keys[1])
    w3, b3 = conv_params(keys[2])
    return w1, b1, w2, b2, w3, b3


if __name__ == "__main__":
    key = jax.random.PRNGKey(0)
    B, N, T = 2, 16, 8                 # batch, nodes, timesteps
    in_channels, out_channels = 4, 32

    kx, kp = jax.random.split(key)
    X = jax.random.normal(kx, (B, N, T, in_channels), jnp.float32)
    params = init_params(kp, in_channels, out_channels)

    fwd = jax.jit(timeblock_forward)
    y = fwd(X, *params)
    jax.block_until_ready(y)

    assert y.shape == (B, N, T - KS + 1, out_channels), y.shape
    assert bool(jnp.all(jnp.isfinite(y)))

    # Correctness vs pure-JAX reference (bf16 MXU operands -> loose tolerance).
    y_ref = timeblock_reference(X, *params)
    max_err = float(jnp.max(jnp.abs(y - y_ref)))
    assert max_err < 5e-2, f"max abs error {max_err}"

    print("KERNEL_OK")
</pallas_src>

<mosaic_0001>
module attributes {stable_mosaic.version = 11 : i64} {
  func.func @timeblock_kernel(%arg0: i32, %arg1: memref<32x32xf32, #tpu.memory_space<vmem>>, %arg2: memref<32x768xbf16, #tpu.memory_space<vmem>>, %arg3: memref<1x768xf32, #tpu.memory_space<vmem>>, %arg4: memref<32x192xf32, #tpu.memory_space<vmem>>) attributes {dimension_semantics = [#tpu.dimension_semantics<parallel>], iteration_bounds = array<i64: 1>, scalar_prefetch = 0 : i64, scratch_operands = 0 : i64, tpu.core_type = #tpu.core_type<tc>, window_params = [{transform_indices = @transform_0, window_bounds = array<i64: 32, 32>}, {pipeline_mode = #tpu.pipeline_mode<synchronous>, transform_indices = @transform_1, window_bounds = array<i64: 32, 768>}, {pipeline_mode = #tpu.pipeline_mode<synchronous>, transform_indices = @transform_2, window_bounds = array<i64: 1, 768>}, {transform_indices = @transform_3, window_bounds = array<i64: 32, 192>}]} {
    %c0 = arith.constant 0 : index
    %c0_0 = arith.constant 0 : index
    %0 = vector.load %arg1[%c0, %c0_0] : memref<32x32xf32, #tpu.memory_space<vmem>>, vector<32x32xf32>
    %1 = arith.truncf %0 : vector<32x32xf32> to vector<32x32xbf16>
    %c0_1 = arith.constant 0 : index
    %c0_2 = arith.constant 0 : index
    %2 = vector.load %arg2[%c0_1, %c0_2] : memref<32x768xbf16, #tpu.memory_space<vmem>>, vector<32x768xbf16>
    %cst = arith.constant dense<0.000000e+00> : vector<32x768xf32>
    %3 = tpu.matmul %1, %2, %cst {dimension_numbers = #tpu.dot_dimension_numbers<[1], [0], [0], [1], [0, 0, 1, 1], [], []>} : vector<32x32xbf16>, vector<32x768xbf16>, vector<32x768xf32> -> vector<32x768xf32>
    %c0_3 = arith.constant 0 : index
    %c0_4 = arith.constant 0 : index
    %4 = vector.load %arg3[%c0_3, %c0_4] : memref<1x768xf32, #tpu.memory_space<vmem>>, vector<1x768xf32>
    %5 = vector.broadcast %4 : vector<1x768xf32> to vector<32x768xf32>
    %6 = arith.addf %3, %5 : vector<32x768xf32>
    %7 = vector.extract_strided_slice %6 {offsets = [0, 0], sizes = [32, 256], strides = [1, 1]} : vector<32x768xf32> to vector<32x256xf32>
    %8 = vector.extract_strided_slice %6 {offsets = [0, 256], sizes = [32, 256], strides = [1, 1]} : vector<32x768xf32> to vector<32x256xf32>
    %9 = vector.extract_strided_slice %6 {offsets = [0, 512], sizes = [32, 256], strides = [1, 1]} : vector<32x768xf32> to vector<32x256xf32>
    %10 = arith.negf %8 : vector<32x256xf32>
    %11 = math.exp %10 : vector<32x256xf32>
    %cst_5 = arith.constant 1.000000e+00 : f32
    %12 = vector.broadcast %cst_5 : f32 to vector<32x256xf32>
    %13 = arith.addf %12, %11 : vector<32x256xf32>
    %14 = arith.divf %12, %13 : vector<32x256xf32>
    %15 = arith.addf %7, %14 : vector<32x256xf32>
    %16 = arith.addf %15, %9 : vector<32x256xf32>
    %cst_6 = arith.constant 0.000000e+00 : f32
    %17 = vector.broadcast %cst_6 : f32 to vector<32x256xf32>
    %18 = arith.maximumf %16, %17 : vector<32x256xf32>
    %19 = vector.extract_strided_slice %18 {offsets = [0, 0], sizes = [32, 192], strides = [1, 1]} : vector<32x256xf32> to vector<32x192xf32>
    %c0_7 = arith.constant 0 : index
    %c0_8 = arith.constant 0 : index
    %20 = vector.load %arg4[%c0_7, %c0_8] : memref<32x192xf32, #tpu.memory_space<vmem>>, vector<32x192xf32>
    tpu.vector_store %arg4[%c0_7, %c0_8], %19 {strides = array<i32>} : memref<32x192xf32, #tpu.memory_space<vmem>>, vector<32x192xf32>,
    return
  }
  func.func @transform_0(%arg0: i32) -> (i32, i32) {
    %c0_i32 = arith.constant 0 : i32
    %c0_i32_0 = arith.constant 0 : i32
    return %arg0, %c0_i32 : i32, i32
  }
  func.func @transform_1(%arg0: i32) -> (i32, i32) {
    %c0_i32 = arith.constant 0 : i32
    %c0_i32_0 = arith.constant 0 : i32
    %c0_i32_1 = arith.constant 0 : i32
    return %c0_i32, %c0_i32_0 : i32, i32
  }
  func.func @transform_2(%arg0: i32) -> (i32, i32) {
    %c0_i32 = arith.constant 0 : i32
    %c0_i32_0 = arith.constant 0 : i32
    %c0_i32_1 = arith.constant 0 : i32
    return %c0_i32, %c0_i32_0 : i32, i32
  }
  func.func @transform_3(%arg0: i32) -> (i32, i32) {
    %c0_i32 = arith.constant 0 : i32
    %c0_i32_0 = arith.constant 0 : i32
    return %arg0, %c0_i32 : i32, i32
  }
}

</mosaic_0001>

<bundles_post_ra>
// kernel: timeblock_forward.1
= control target key start
LH: loop header
LB: loop body
LE: loop exit
PB: predicated region body
PF: predicated region fallthrough
CT: control target
= control target key end

     0   :  { %v489_v1 = vmov 0   ;;  %vm125_vm0 = vcmask 261120   ;;  %v35_v19 = vlaneseq  ;;  %vm364_vm1 = vcmask 523264   ;;  %s604_s1 = inlined_call_operand.vmem [shape: bf16[32,768], index: 1, kind: input, shape index: {}]   ;;  %s605_s0 = inlined_call_operand.vmem [shape: f32[32,32], index: 0, kind: input, shape index: {}]   ;;  %s606_s2 = inlined_call_operand.vmem [shape: f32[1,768], index: 2, kind: input, shape index: {}]   ;;  %s607_s3 = inlined_call_operand.vmem [shape: f32[32,192], index: 3, kind: output, shape index: {}]  }
   0x1   :  { %v439_v0 = vld [vmem:[%s604_s1 + $0x4] ss:$24 sps:$4 sm:$0xff]   ;;  %164 = vmatprep.mubr.bf16.mxu0 %v489_v1  ;;  %174 = vmatprep.mubr.bf16.mxu1 %v489_v1  ;;  %v441_v2 = vld [vmem:[%s604_s1] ss:$24 sps:$4 sm:$0xff]   ;;  %v442_v3 = vld [vmem:[%s604_s1 + $0x34] ss:$24 sps:$4 sm:$0xff]  }
   0x2   :  { %132 = vmatprep.subr.bf16.mxu0 %v439_v0  ;;  %402 = vmatprep.subr.bf16.mxu1 %v439_v0  ;;  %v444_v4 = vld [vmem:[%s604_s1 + $0x30] ss:$24 sps:$4 sm:$0xff]   ;;  %v15_v5 = vld [vmem:[%s605_s0] sm:$0xff]  ;;  %v18_v8 = vld [vmem:[%s605_s0 + $0x18] sm:$0xff]  ;;  %v36_v20 = vshrl.u32 %v35_v19, 7 }
   0x3   :  { %133 = vmatpush1.bf16.msra.mxu0 %v441_v2  ;;  %404 = vmatpush1.bf16.msra.mxu1 %v441_v2  ;;  %v16_v6 = vld [vmem:[%s605_s0 + $0x8] sm:$0xff]  ;;  %v17_v7 = vld [vmem:[%s605_s0 + $0x10] sm:$0xff]  ;;  %v456_v16 = vld [vmem:[%s604_s1 + $0x44] ss:$24 sps:$4 sm:$0xff]  }
   0x4   :  { %134 = vmatprep.subr.bf16.mxu0 %v442_v3  ;;  %403 = vmatprep.subr.bf16.mxu1 %v442_v3  ;;  %v447_v9 = vld [vmem:[%s604_s1 + $0xc] ss:$24 sps:$4 sm:$0xff]   ;;  %v19_v10 = vpack.c.bf16 %v16_v6, %v15_v5  ;;  %v20_v11 = vpack.c.bf16 %v18_v8, %v17_v7  ;;  %v445_v12 = vld [vmem:[%s604_s1 + $0x8] ss:$24 sps:$4 sm:$0xff]   ;;  %v450_v15 = vld [vmem:[%s604_s1 + $0x3c] ss:$24 sps:$4 sm:$0xff]  }
   0x5   :  { %v451_v13 = vld [vmem:[%s604_s1 + $0x10] ss:$24 sps:$4 sm:$0xff]   ;;  %v453_v14 = vld [vmem:[%s604_s1 + $0x14] ss:$24 sps:$4 sm:$0xff]   ;;  %v454_v18 = vld [vmem:[%s604_s1 + $0x40] ss:$24 sps:$4 sm:$0xff]  }
   0x6   :  { %v448_v17 = vld [vmem:[%s604_s1 + $0x38] ss:$24 sps:$4 sm:$0xff]   ;;  %v45_v23 = vsub.s32 2, %v36_v20  ;;  %v49_v25 = vsub.s32 3, %v36_v20  ;;  %v33_v27 = vld [vmem:[%s606_s2] sm:$0x3f] }
   0x7   :  { %135 = vmatpush1.bf16.msra.mxu0 %v444_v4  ;;  %405 = vmatpush1.bf16.msra.mxu1 %v444_v4  ;;  %v37_v30 = vsub.s32 0, %v36_v20  ;;  %v53_v31 = vsub.s32 4, %v36_v20  ;;  %v41_v32 = vsub.s32 1, %v36_v20  ;;  %v57_v33 = vsub.s32 5, %v36_v20 }
   0x8   :  { %185 = vmatprep.subr.bf16.mxu1 %v447_v9  ;;  %238 = vmatprep.subr.bf16.mxu0 %v453_v14  ;;  %v46_v28 = vrot.slane %v33_v27, %v45_v23  ;;  %v50_v29 = vrot.slane %v33_v27, %v49_v25 }
   0x9   :  { %v38_v39 = vrot.slane %v33_v27, %v37_v30  ;;  %v54_v40 = vrot.slane %v33_v27, %v53_v31  ;;  %v42_v44 = vrot.slane %v33_v27, %v41_v32  ;;  %v58_v45 = vrot.slane %v33_v27, %v57_v33 }
   0xa   :  { %388 = vmatmul.mubr.msk.bf16.vlgmr.msra.gmra.mrb[0].mxu0 %vm125_vm0, %v19_v10  ;;  %389 = vmatmul.mubr.msk.bf16.vlgmr.msra.gmra.mrb[0].mxu1 %vm125_vm0, %v20_v11 }
   0xb   :  { %186 = vmatpush1.bf16.msra.mxu1 %v445_v12  ;;  %239 = vmatpush1.bf16.msra.mxu0 %v451_v13  ;;  %v406_v53 = vadd.f32 %v54_v40, %v38_v39  ;;  %v569_v55 = vadd.f32 %v58_v45, %v42_v44 }
   0xc   :  { %187 = vmatprep.subr.bf16.mxu1 %v450_v15  ;;  %217 = vmatprep.mubr.bf16.mxu1 %v489_v1 }
   0xd   :  { %240 = vmatprep.subr.bf16.mxu0 %v456_v16  ;;  %270 = vmatprep.mubr.bf16.mxu0 %v489_v1 }
   0xf   :  { %188 = vmatpush1.bf16.msra.mxu1 %v448_v17  ;;  %241 = vmatpush1.bf16.msra.mxu0 %v454_v18 }
  0x12   :  { %390 = vmatmul.mubr.msk.bf16.vlgmr.msra.gmra.mrb[4].mxu1 %vm125_vm0, %v19_v10 }
  0x13   :  { %227 = vmatprep.mubr.bf16.mxu1 %v489_v1 }
  0x16   :  { %392 = vmatmul.mubr.msk.bf16.vlgmr.msra.gmra.mrb[0].mxu0 %vm125_vm0, %v19_v10 }
  0x17   :  { %280 = vmatprep.mubr.bf16.mxu0 %v489_v1 }
  0x1a   :  { %391 = vmatmul.mubr.msk.bf16.gmra.mrb[8].mxu1 %vm125_vm0, %v20_v11 }
  0x1e   :  { %393 = vmatmul.mubr.msk.bf16.gmra.mrb[4].mxu0 %vm125_vm0, %v20_v11 }
  0xdd   :  { %v176_v21 = vpop.f32.mrb[0].mxu1 }
  0xde   :  { %v178_v22 = vpop.f32.mrb[1].mxu1  ;;  %v419_v61 = vadd.f32 %v406_v53, %v176_v21 }
  0xdf   :  { %v180_v24 = vpop.f32.mrb[2].mxu1  ;;  %v423_v1 = vadd.f32 %v569_v55, %v178_v22 }
  0xe0   :  { %v182_v26 = vpop.f32.mrb[3].mxu1  ;;  %v427_v5 = vadd.f32 %v406_v53, %v180_v24 }
  0xe1   :  { %v431_v9 = vadd.f32 %v569_v55, %v182_v26 }
  0xe5   :  { %v219_v34 = vpop.f32.mrb[4].mxu1 }
  0xe6   :  { %v220_v35 = vadd.f32 %v219_v34, %v46_v28  ;;  %v221_v36 = vpop.f32.mrb[5].mxu1 }
  0xe7   :  { %v222_v37 = vadd.f32 %v221_v36, %v50_v29  ;;  %v223_v38 = vpop.f32.mrb[6].mxu1 }
  0xe8   :  { %v394_v41 = vmul.f32 -1.442695, %v220_v35  ;;  %v224_v42 = vadd.f32 %v223_v38, %v46_v28  ;;  %v225_v43 = vpop.f32.mrb[7].mxu1 }
  0xe9   :  { %v395_v46 = vmul.f32 -1.442695, %v222_v37  ;;  %v226_v47 = vadd.f32 %v225_v43, %v50_v29  ;;  %v272_v48 = vpop.f32.mrb[0].mxu0 }
  0xea   :  { %457 = vpow2.f32 %v394_v41  ;;  %v396_v49 = vmul.f32 -1.442695, %v224_v42  ;;  %v274_v50 = vpop.f32.mrb[1].mxu0  ;;  %v407_v31 = vadd.f32 %v406_v53, %v272_v48 }
  0xeb   :  { %459 = vpow2.f32 %v395_v46  ;;  %v397_v51 = vmul.f32 -1.442695, %v226_v47  ;;  %v276_v52 = vpop.f32.mrb[2].mxu0  ;;  %v410_v34 = vadd.f32 %v569_v55, %v274_v50 }
  0xec   :  { %461 = vpow2.f32 %v396_v49  ;;  %v567_v54 = vpop.f32.mrb[3].mxu0  ;;  %v413_v37 = vadd.f32 %v406_v53, %v276_v52 }
  0xed   :  { %463 = vpow2.f32 %v397_v51  ;;  %v229_v56 = vpop.f32.mrb[8].mxu1  ;;  %v416_v40 = vadd.f32 %v569_v55, %v567_v54 }
  0xee   :  { %v230_v57 = vadd.f32 %v229_v56, %v46_v28  ;;  %v231_v58 = vpop.f32.mrb[9].mxu1 }
  0xef   :  { %v232_v59 = vadd.f32 %v231_v58, %v50_v29  ;;  %v233_v60 = vpop.f32.mrb[10].mxu1 }
  0xf0   :  { %v398_v62 = vmul.f32 -1.442695, %v230_v57  ;;  %v234_v63 = vadd.f32 %v233_v60, %v46_v28  ;;  %v235_v0 = vpop.f32.mrb[11].mxu1 }
  0xf1   :  { %v399_v2 = vmul.f32 -1.442695, %v232_v59  ;;  %v236_v3 = vadd.f32 %v235_v0, %v50_v29  ;;  %v282_v4 = vpop.f32.mrb[4].mxu0 }
  0xf2   :  { %465 = vpow2.f32 %v398_v62  ;;  %v400_v6 = vmul.f32 -1.442695, %v234_v63  ;;  %v420_v7 = vadd.f32 %v419_v61, %v282_v4  ;;  %v284_v8 = vpop.f32.mrb[5].mxu0 }
  0xf3   :  { %467 = vpow2.f32 %v399_v2  ;;  %v401_v10 = vmul.f32 -1.442695, %v236_v3  ;;  %v424_v11 = vadd.f32 %v423_v1, %v284_v8  ;;  %v286_v12 = vpop.f32.mrb[6].mxu0 }
  0xf4   :  { %v458_v13 = vpop.eup %457  ;;  %469 = vpow2.f32 %v400_v6  ;;  %v428_v14 = vadd.f32 %v427_v5, %v286_v12  ;;  %v288_v15 = vpop.f32.mrb[7].mxu0 }
  0xf5   :  { %v460_v16 = vpop.eup %459  ;;  %v315_v17 = vadd.f32 1.0, %v458_v13  ;;  %471 = vpow2.f32 %v401_v10  ;;  %v432_v18 = vadd.f32 %v431_v9, %v288_v15 }
  0xf6   :  { %v462_v19 = vpop.eup %461  ;;  %v316_v20 = vadd.f32 1.0, %v460_v16 }
  0xf7   :  { %v464_v21 = vpop.eup %463  ;;  %473 = vrcp.f32 %v315_v17  ;;  %v317_v22 = vadd.f32 1.0, %v462_v19 }
  0xf8   :  { %475 = vrcp.f32 %v316_v20  ;;  %v318_v23 = vadd.f32 1.0, %v464_v21 }
  0xf9   :  { %477 = vrcp.f32 %v317_v22 }
  0xfa   :  { %479 = vrcp.f32 %v318_v23 }
  0xfc   :  { %v466_v24 = vpop.eup %465 }
  0xfd   :  { %v468_v25 = vpop.eup %467  ;;  %v319_v26 = vadd.f32 1.0, %v466_v24 }
  0xfe   :  { %v470_v27 = vpop.eup %469  ;;  %v320_v28 = vadd.f32 1.0, %v468_v25 }
  0xff   :  { %v472_v29 = vpop.eup %471  ;;  %481 = vrcp.f32 %v319_v26  ;;  %v321_v30 = vadd.f32 1.0, %v470_v27 }
 0x100   :  { %483 = vrcp.f32 %v320_v28  ;;  %v322_v32 = vadd.f32 1.0, %v472_v29 }
 0x101   :  { %v474_v33 = vpop.eup %473  ;;  %485 = vrcp.f32 %v321_v30 }
 0x102   :  { %v476_v35 = vpop.eup %475  ;;  %v408_v36 = vadd.f32 %v474_v33, %v407_v31  ;;  %487 = vrcp.f32 %v322_v32 }
 0x103   :  { %v478_v38 = vpop.eup %477  ;;  %v411_v39 = vadd.f32 %v476_v35, %v410_v34 }
 0x104   :  { %v480_v41 = vpop.eup %479  ;;  %v355_v42 = vmax.f32 %v408_v36, 0.0  ;;  %v414_v43 = vadd.f32 %v478_v38, %v413_v37 }
 0x105   :  { %v356_v44 = vmax.f32 %v411_v39, 0.0  ;;  %v417_v45 = vadd.f32 %v480_v41, %v416_v40 }
 0x106   :  { %363 = vst [vmem:[%s607_s3] sm:$0xff] %v355_v42  ;;  %v357_v46 = vmax.f32 %v414_v43, 0.0 }
 0x107   :  { %365 = vst.msk [vmem:[%s607_s3 + $0x8] sm:$0xff] %vm364_vm1, %v356_v44  ;;  %v358_v47 = vmax.f32 %v417_v45, 0.0 }
 0x108   :  { %366 = vst [vmem:[%s607_s3 + $0x10] sm:$0xff] %v357_v46 }
 0x109   :  { %v482_v48 = vpop.eup %481  ;;  %367 = vst.msk [vmem:[%s607_s3 + $0x18] sm:$0xff] %vm364_vm1, %v358_v47 }
 0x10a   :  { %v484_v49 = vpop.eup %483  ;;  %v421_v50 = vadd.f32 %v482_v48, %v420_v7 }
 0x10b   :  { %v486_v51 = vpop.eup %485  ;;  %v425_v52 = vadd.f32 %v484_v49, %v424_v11 }
 0x10c   :  { %v488_v53 = vpop.eup %487  ;;  %v359_v54 = vmax.f32 %v421_v50, 0.0  ;;  %v429_v55 = vadd.f32 %v486_v51, %v428_v14 }
 0x10d   :  { %v360_v56 = vmax.f32 %v425_v52, 0.0  ;;  %v433_v57 = vadd.f32 %v488_v53, %v432_v18 }
 0x10e   :  { %368 = vst [vmem:[%s607_s3 + $0x20] sm:$0xff] %v359_v54  ;;  %v361_v58 = vmax.f32 %v429_v55, 0.0 }
 0x10f   :  { %369 = vst.msk [vmem:[%s607_s3 + $0x28] sm:$0xff] %vm364_vm1, %v360_v56  ;;  %v362_v59 = vmax.f32 %v433_v57, 0.0 }
 0x110   :  { %370 = vst [vmem:[%s607_s3 + $0x30] sm:$0xff] %v361_v58 }
 0x111   :  { %371 = vst.msk [vmem:[%s607_s3 + $0x38] sm:$0xff] %vm364_vm1, %v362_v59 }

</bundles_post_ra>
